<compile_context>
chip_gen: v5e
topology: v5e:2x2
jax: 0.10.0
libtpu: 0.0.40
codegen_flags: <defaults>
</compile_context>

<pallas_src>
import jax
import jax.numpy as jnp
from jax import lax
from jax.experimental import pallas as pl
from jax.experimental.pallas import tpu as pltpu


def dummy_model_kernel(x_ref, wc_ref, bc_ref, wl_ref, bl_ref, ot_ref):
    # x_ref:  (TB, 300) f32  flattened NCHW input tile (cast to bf16 in-kernel)
    # wc_ref: (300, 8)  bf16 conv weight reshaped/transposed to (C*kh*kw, out_ch)
    # bc_ref: (1, 8)    f32  conv bias
    # wl_ref: (2, 8)    bf16 linear weight, kept in (out, in) orientation
    # bl_ref: (2, 1)    f32  linear bias
    # ot_ref: (2, TB)   f32  lane-dense (transposed) output tile
    x = x_ref[...].astype(jnp.bfloat16)                          # in-kernel cast (VPU)

    # Conv2d(3, 8, kernel_size=10) on a 10x10 input == full-receptive-field matmul.
    h = jnp.dot(x, wc_ref[...], preferred_element_type=jnp.float32)  # (TB, 8)
    # bias + ReLU
    h = jnp.maximum(h + bc_ref[...], 0.0)
    # Dropout (eval mode) == identity.

    # Linear(8, 2), computed lane-dense as  o^T = W_lin @ h^T  via the
    # "NT" dot_general (contract last dim of both operands) -> (2, TB).
    h16 = h.astype(jnp.bfloat16)
    o_t = lax.dot_general(
        wl_ref[...], h16,
        dimension_numbers=(((1,), (1,)), ((), ())),
        preferred_element_type=jnp.float32)                      # (2, TB)
    ot_ref[...] = (o_t + bl_ref[...]).astype(ot_ref.dtype)


def _round_up(v, m):
    return ((v + m - 1) // m) * m


def _choose_tile(B, block_b):
    """Pick the batch tile size TB.

    Legality: either TB == B (full-dim exception of the (8,128) rule on both the
    x sublane axis and the lane-dense output lane axis), or TB must be a
    multiple of 128.  Perf: aim for >= 8 grid steps so ("parallel",) can feed
    both TensorCores on v7x, but cap at block_b so the x double-buffers
    (2 x TB x 384 lanes x 4 B, ~6.3 MiB at TB=2048) stay inside the scoped
    VMEM defaults on every generation.
    """
    if B < 256:
        return B                      # single full-size tile, no padding needed
    target = _round_up(pl.cdiv(B, 8), 128)
    return max(128, min(block_b, target))


def dummy_model_forward(x_nchw, conv_w, conv_b, lin_w, lin_b, *, block_b=2048):
    """x_nchw: (B, 3, 10, 10); conv_w: (8, 3, 10, 10); conv_b: (8,);
    lin_w: (2, 8); lin_b: (2,).  Returns (B, 2) float32."""
    B, C, H, W = x_nchw.shape
    OC, CC, KH, KW = conv_w.shape
    # Conv-as-matmul is only valid when the kernel covers the full spatial extent.
    assert (C, H, W) == (CC, KH, KW), "conv kernel must cover full input spatial extent"
    NO, NI = lin_w.shape
    assert NI == OC and lin_b.shape == (NO,)
    K = C * H * W  # 300

    # Zero-copy glue: reshape of contiguous NCHW is a view; x stays f32 in HBM.
    x_flat = x_nchw.reshape(B, K)                            # (B, 300) f32
    wc = conv_w.reshape(OC, K).T.astype(jnp.bfloat16)        # (300, 8)
    bc = conv_b.reshape(1, OC).astype(jnp.float32)           # (1, 8)
    wl = lin_w.astype(jnp.bfloat16)                          # (2, 8), (out, in)
    bl = lin_b.reshape(NO, 1).astype(jnp.float32)            # (2, 1)

    tb = _choose_tile(B, block_b)
    n_tiles = pl.cdiv(B, tb)                                 # ragged last tile masked by Pallas

    def const_spec(shape):
        # Weights/biases: constant index map -> DMA'd once, VMEM-resident across steps.
        return pl.BlockSpec(shape, lambda i, _nd=len(shape): (0,) * _nd)

    out_t = pl.pallas_call(
        dummy_model_kernel,
        out_shape=jax.ShapeDtypeStruct((NO, B), jnp.float32),   # lane-dense (2, B)
        grid=(n_tiles,),
        in_specs=[
            pl.BlockSpec((tb, K), lambda i: (i, 0)),   # x: streamed per batch tile
            const_spec(wc.shape),
            const_spec(bc.shape),
            const_spec(wl.shape),
            const_spec(bl.shape),
        ],
        out_specs=pl.BlockSpec((NO, tb), lambda i: (0, i)),
        compiler_params=pltpu.CompilerParams(
            dimension_semantics=("parallel",),   # shard batch tiles across TCs (v7x)
        ),
    )(x_flat, wc, bc, wl, bl)

    return out_t.T  # (B, 2); tiny transpose in plain JAX


def init_params(key):
    """Deterministic parameter init (PyTorch-style uniform fan-in bounds)."""
    k1, k2, k3, k4 = jax.random.split(key, 4)
    fan_conv = 3 * 10 * 10
    bound_c = 1.0 / jnp.sqrt(fan_conv)
    conv_w = jax.random.uniform(k1, (8, 3, 10, 10), jnp.float32, -bound_c, bound_c)
    conv_b = jax.random.uniform(k2, (8,), jnp.float32, -bound_c, bound_c)
    fan_lin = 8
    bound_l = 1.0 / jnp.sqrt(fan_lin)
    lin_w = jax.random.uniform(k3, (2, 8), jnp.float32, -bound_l, bound_l)
    lin_b = jax.random.uniform(k4, (2,), jnp.float32, -bound_l, bound_l)
    return conv_w, conv_b, lin_w, lin_b


if __name__ == "__main__":
    key = jax.random.PRNGKey(0)
    kx, kp = jax.random.split(key)
    # Input must be (B, 3, 10, 10) so conv output is (B, 8, 1, 1) -> flatten -> Linear(8, 2).
    B = 2
    x = jax.random.normal(kx, (B, 3, 10, 10), jnp.float32)
    conv_w, conv_b, lin_w, lin_b = init_params(kp)

    out = dummy_model_forward(x, conv_w, conv_b, lin_w, lin_b)
    out = jax.block_until_ready(out)

    # Reference of the same math, applying the same bf16 operand casts the
    # kernel uses (f32 accumulation), so tolerances stay tight.
    x_b = x.reshape(B, -1).astype(jnp.bfloat16).astype(jnp.float32)
    wc_b = conv_w.reshape(8, -1).T.astype(jnp.bfloat16).astype(jnp.float32)
    h_r = jnp.maximum(x_b @ wc_b + conv_b, 0.0)
    wl_b = lin_w.astype(jnp.bfloat16).astype(jnp.float32)
    ref = h_r.astype(jnp.bfloat16).astype(jnp.float32) @ wl_b.T + lin_b

    assert out.shape == (B, 2)
    assert jnp.allclose(out, ref, atol=2e-3, rtol=2e-3), "mismatch vs reference"

    print("KERNEL_OK")
</pallas_src>

<mosaic_0001>
module attributes {stable_mosaic.version = 11 : i64} {
  func.func @dummy_model_kernel(%arg0: i32, %arg1: memref<2x300xf32, #tpu.memory_space<vmem>>, %arg2: memref<300x8xbf16, #tpu.memory_space<vmem>>, %arg3: memref<1x8xf32, #tpu.memory_space<vmem>>, %arg4: memref<2x8xbf16, #tpu.memory_space<vmem>>, %arg5: memref<2x1xf32, #tpu.memory_space<vmem>>, %arg6: memref<2x2xf32, #tpu.memory_space<vmem>>) attributes {dimension_semantics = [#tpu.dimension_semantics<parallel>], iteration_bounds = array<i64: 1>, scalar_prefetch = 0 : i64, scratch_operands = 0 : i64, tpu.core_type = #tpu.core_type<tc>, window_params = [{transform_indices = @transform_0, window_bounds = array<i64: 2, 300>}, {pipeline_mode = #tpu.pipeline_mode<synchronous>, transform_indices = @transform_1, window_bounds = array<i64: 300, 8>}, {pipeline_mode = #tpu.pipeline_mode<synchronous>, transform_indices = @transform_2, window_bounds = array<i64: 1, 8>}, {pipeline_mode = #tpu.pipeline_mode<synchronous>, transform_indices = @transform_3, window_bounds = array<i64: 2, 8>}, {pipeline_mode = #tpu.pipeline_mode<synchronous>, transform_indices = @transform_4, window_bounds = array<i64: 2, 1>}, {transform_indices = @transform_5, window_bounds = array<i64: 2, 2>}]} {
    %c0 = arith.constant 0 : index
    %c0_0 = arith.constant 0 : index
    %0 = vector.load %arg1[%c0, %c0_0] : memref<2x300xf32, #tpu.memory_space<vmem>>, vector<2x300xf32>
    %1 = arith.truncf %0 : vector<2x300xf32> to vector<2x300xbf16>
    %c0_1 = arith.constant 0 : index
    %c0_2 = arith.constant 0 : index
    %2 = vector.load %arg2[%c0_1, %c0_2] : memref<300x8xbf16, #tpu.memory_space<vmem>>, vector<300x8xbf16>
    %cst = arith.constant dense<0.000000e+00> : vector<2x8xf32>
    %3 = tpu.matmul %1, %2, %cst {dimension_numbers = #tpu.dot_dimension_numbers<[1], [0], [0], [1], [0, 0, 1, 1], [], []>} : vector<2x300xbf16>, vector<300x8xbf16>, vector<2x8xf32> -> vector<2x8xf32>
    %c0_3 = arith.constant 0 : index
    %c0_4 = arith.constant 0 : index
    %4 = vector.load %arg3[%c0_3, %c0_4] : memref<1x8xf32, #tpu.memory_space<vmem>>, vector<1x8xf32>
    %5 = vector.broadcast %4 : vector<1x8xf32> to vector<2x8xf32>
    %6 = arith.addf %3, %5 : vector<2x8xf32>
    %cst_5 = arith.constant 0.000000e+00 : f32
    %7 = vector.broadcast %cst_5 : f32 to vector<2x8xf32>
    %8 = arith.maximumf %6, %7 : vector<2x8xf32>
    %9 = arith.truncf %8 : vector<2x8xf32> to vector<2x8xbf16>
    %c0_6 = arith.constant 0 : index
    %c0_7 = arith.constant 0 : index
    %10 = vector.load %arg4[%c0_6, %c0_7] : memref<2x8xbf16, #tpu.memory_space<vmem>>, vector<2x8xbf16>
    %cst_8 = arith.constant dense<0.000000e+00> : vector<2x2xf32>
    %11 = tpu.matmul %10, %9, %cst_8 {dimension_numbers = #tpu.dot_dimension_numbers<[1], [1], [0], [0], [0, 0, 1, 0], [], []>} : vector<2x8xbf16>, vector<2x8xbf16>, vector<2x2xf32> -> vector<2x2xf32>
    %c0_9 = arith.constant 0 : index
    %c0_10 = arith.constant 0 : index
    %12 = vector.load %arg5[%c0_9, %c0_10] : memref<2x1xf32, #tpu.memory_space<vmem>>, vector<2x1xf32>
    %13 = vector.broadcast %12 : vector<2x1xf32> to vector<2x2xf32>
    %14 = arith.addf %11, %13 : vector<2x2xf32>
    %c0_11 = arith.constant 0 : index
    %c0_12 = arith.constant 0 : index
    %15 = vector.load %arg6[%c0_11, %c0_12] : memref<2x2xf32, #tpu.memory_space<vmem>>, vector<2x2xf32>
    tpu.vector_store %arg6[%c0_11, %c0_12], %14 {strides = array<i32>} : memref<2x2xf32, #tpu.memory_space<vmem>>, vector<2x2xf32>,
    return
  }
  func.func @transform_0(%arg0: i32) -> (i32, i32) {
    %c0_i32 = arith.constant 0 : i32
    %c0_i32_0 = arith.constant 0 : i32
    return %arg0, %c0_i32 : i32, i32
  }
  func.func @transform_1(%arg0: i32) -> (i32, i32) {
    %c0_i32 = arith.constant 0 : i32
    %c0_i32_0 = arith.constant 0 : i32
    %c0_i32_1 = arith.constant 0 : i32
    return %c0_i32, %c0_i32_0 : i32, i32
  }
  func.func @transform_2(%arg0: i32) -> (i32, i32) {
    %c0_i32 = arith.constant 0 : i32
    %c0_i32_0 = arith.constant 0 : i32
    %c0_i32_1 = arith.constant 0 : i32
    return %c0_i32, %c0_i32_0 : i32, i32
  }
  func.func @transform_3(%arg0: i32) -> (i32, i32) {
    %c0_i32 = arith.constant 0 : i32
    %c0_i32_0 = arith.constant 0 : i32
    %c0_i32_1 = arith.constant 0 : i32
    return %c0_i32, %c0_i32_0 : i32, i32
  }
  func.func @transform_4(%arg0: i32) -> (i32, i32) {
    %c0_i32 = arith.constant 0 : i32
    %c0_i32_0 = arith.constant 0 : i32
    %c0_i32_1 = arith.constant 0 : i32
    return %c0_i32, %c0_i32_0 : i32, i32
  }
  func.func @transform_5(%arg0: i32) -> (i32, i32) {
    %c0_i32 = arith.constant 0 : i32
    %c0_i32_0 = arith.constant 0 : i32
    return %c0_i32, %arg0 : i32, i32
  }
}

</mosaic_0001>

<bundles_post_ra>
// kernel: tpu_custom_call.1
= control target key start
LH: loop header
LB: loop body
LE: loop exit
PB: predicated region body
PF: predicated region fallthrough
CT: control target
= control target key end

     0   :  { %vm193_vm0 = vcmask 1045504   ;;  %s517_s0 = inlined_call_operand.vmem [shape: f32[2,300], index: 0, kind: input, shape index: {}]   ;;  %s518_s1 = inlined_call_operand.vmem [shape: bf16[300,8], index: 1, kind: input, shape index: {}]   ;;  %s519_s2 = inlined_call_operand.vmem [shape: f32[1,8], index: 2, kind: input, shape index: {}]   ;;  %s520_s3 = inlined_call_operand.vmem [shape: bf16[2,8], index: 3, kind: input, shape index: {}]   ;;  %s521_s4 = inlined_call_operand.vmem [shape: f32[2,1], index: 4, kind: input, shape index: {}]   ;;  %s522_s5 = inlined_call_operand.hbm [shape: f32[2,2], index: 5, kind: output, shape index: {}]  }
   0x1   :  { %v368_v0 = vld [vmem:[%s518_s1 + $0x38] sm:$0xff]  ;;  %v367_v2 = vld [vmem:[%s518_s1 + $0x30] sm:$0xff]  ;;  %v22_v8 = vld [vmem:[%s517_s0] sm:$0x3f] }
   0x2   :  { %v376_v1 = vld [vmem:[%s518_s1 + $0x78] sm:$0xff]  ;;  %197 = vmatpush.bf16.msra.mxu0 %v368_v0  ;;  %v375_v3 = vld [vmem:[%s518_s1 + $0x70] sm:$0xff]  ;;  %v366_v9 = vld [vmem:[%s518_s1 + $0x28] sm:$0xff]  ;;  %24 = vst [vmem:[#allocation1] ss:$4 sm:$0xff] %v22_v8 }
   0x3   :  { %210 = vmatpush.bf16.msra.mxu1 %v376_v1  ;;  %v357_v4 = vld [vmem:[%s518_s1 + $0x90] sm:$0xf]  ;;  %v379_v5 = vld [vmem:[%s518_s1 + $0x90] sm:$0x30]  ;;  %v374_v10 = vld [vmem:[%s518_s1 + $0x68] sm:$0xff] }
   0x4   :  { %v358_v6 = vor.u32 %v379_v5, %v357_v4  ;;  %v378_v11 = vld [vmem:[%s518_s1 + $0x88] sm:$0xff] }
   0x6   :  { %v195_v7 = vsel %vm193_vm0, %v358_v6, 0  ;;  %198 = vmatpush.bf16.msra.mxu0 %v367_v2 }
   0x7   :  { %211 = vmatpush.bf16.msra.mxu1 %v375_v3  ;;  %228 = vmatpush.bf16.msra.mxu2 %v195_v7 }
   0x8   :  { %10 = vsyncpa [#allocation3], 0  ;;  %v365_v12 = vld [vmem:[%s518_s1 + $0x20] sm:$0xff]  ;;  %v364_v16 = vld [vmem:[%s518_s1 + $0x18] sm:$0xff]  ;;  %vm189_vm1 = vcmask 359424   ;;  %v410_v30 = vmov 0  }
   0x9   :  { %v373_v13 = vld [vmem:[%s518_s1 + $0x60] sm:$0xff]  ;;  %v27_v15 = vld.sshfl [vmem:[#allocation1 + $0x10] sm:$0xff pattern:$0x73625140]  ;;  %v372_v17 = vld [vmem:[%s518_s1 + $0x58] sm:$0xff]  ;;  %382 = vset.pattern.permute.xlu0 %v410_v30  ;;  %vm245_vm2 = vcmask 64512  }
   0xa   :  { %199 = vmatpush.bf16.msra.mxu0 %v366_v9  ;;  %v377_v14 = vld [vmem:[%s518_s1 + $0x80] sm:$0xff]  ;;  %v33_v18 = vpack.c.bf16 %v27_v15, %v27_v15  ;;  %v363_v19 = vld [vmem:[%s518_s1 + $0x10] sm:$0xff]  ;;  %v362_v21 = vld [vmem:[%s518_s1 + $0x8] sm:$0xff]  ;;  %s274_s15 = sshll.u32 %s522_s5, 4  ;;  %vm265_vm3 = vcmask 9216   ;;  %s275_s15 = int_to_ptr.hbm [resolvable:$true] %s274_s15 }
   0xb   :  { %212 = vmatpush.bf16.msra.mxu1 %v374_v10  ;;  %229 = vmatpush.bf16.msra.mxu2 %v378_v11  ;;  %v371_v20 = vld [vmem:[%s518_s1 + $0x50] sm:$0xff]  ;;  %v370_v22 = vld [vmem:[%s518_s1 + $0x48] sm:$0xff]  ;;  %v361_v23 = vld [vmem:[%s518_s1] sm:$0xff] }
   0xc   :  { %v369_v24 = vld [vmem:[%s518_s1 + $0x40] sm:$0xff]  ;;  %v26_v26 = vld.sshfl [vmem:[#allocation1 + $0x8] sm:$0xff pattern:$0x73625140] }
   0xd   :  { %v25_v25 = vld.sshfl [vmem:[#allocation1] sm:$0xff pattern:$0x73625140]  ;;  %v32_v28 = vpack.c.bf16 %v26_v26, %v26_v26 }
   0xe   :  { %200 = vmatpush.bf16.msra.mxu0 %v365_v12  ;;  %v31_v27 = vpack.c.bf16 %v25_v25, %v25_v25  ;;  %v239_v29 = vld [vmem:[%s521_s4] sm:$0x3] }
   0xf   :  { %213 = vmatpush.bf16.msra.mxu1 %v373_v13  ;;  %230 = vmatpush.bf16.msra.mxu2 %v377_v14  ;;  %v383_v32 = vld [vmem:[%s519_s2] ss:$0 sm:$0xff]  ;;  %s411_s2 = smov [#allocation2]  }
  0x10   :  { %242 = vperm.xlu0 %382, %v239_v29   ;;  %v238_v44 = vld [vmem:[%s520_s3] sm:$0x1]  ;;  %s272_s0 = sshll.u32 %s411_s2, 4  ;;  %s273_s0 = int_to_ptr.vmem [resolvable:$true] %s272_s0 }
  0x12   :  { %201 = vmatpush.bf16.msra.mxu0 %v364_v16  ;;  %359 = vmatmul.msk.bf16.vlgmr.msra.gmra.mxu2 %vm189_vm1, %v33_v18 }
  0x13   :  { %214 = vmatpush.bf16.msra.mxu1 %v372_v17 }
  0x16   :  { %202 = vmatpush.bf16.msra.mxu0 %v363_v19 }
  0x17   :  { %215 = vmatpush.bf16.msra.mxu1 %v371_v20 }
  0x1a   :  { %203 = vmatpush.bf16.msra.mxu0 %v362_v21 }
  0x1b   :  { %216 = vmatpush.bf16.msra.mxu1 %v370_v22 }
  0x1e   :  { %204 = vmatpush.bf16.msra.mxu0 %v361_v23 }
  0x1f   :  { %217 = vmatpush.bf16.msra.mxu1 %v369_v24 }
  0x21   :  { %205 = vmatmul.bf16.vlgmr.msra.gmra.mxu0 %v31_v27 }
  0x22   :  { %218 = vmatmul.bf16.vlgmr.msra.gmra.mxu1 %v32_v28 }
  0x82   :  { %v243_v45 = vpop.permute.xlu0 %242 }
  0x95   :  { %v232_v31 = vpop.f32.mrf.mxu2 }
  0x9d   :  { %v234_v36 = vpop.f32.mrf.mxu2 }
  0x9e   :  { %v206_v33 = vpop.f32.mrf.mxu0 }
  0x9f   :  { %v219_v34 = vpop.f32.mrf.mxu1  ;;  %v207_v35 = vadd.f32 %v383_v32, %v206_v33 }
  0xa1   :  { %v220_v37 = vadd.f32 %v219_v34, %v207_v35 }
  0xa3   :  { %v233_v38 = vadd.f32 %v232_v31, %v220_v37 }
  0xa5   :  { %v236_v39 = vmax.f32 %v233_v38, 0.0 }
  0xa6   :  { %v208_v40 = vpop.f32.mrf.mxu0 }
  0xa7   :  { %v221_v41 = vpop.f32.mrf.mxu1  ;;  %v237_v42 = vpack.c.bf16 %v236_v39, %v236_v39 }
  0xa9   :  { %v250_v43 = vsel %vm245_vm2, %v237_v42, 0 }
  0xaa   :  { %259 = vmatpush.bf16.xpose.msra.mxu3 %v250_v43 }
  0xb1   :  { %360 = vmatmul.msk.bf16.vlgmr.msra.gmra.mxu3 %vm245_vm2, %v238_v44 }
 0x134   :  { %v261_v46 = vpop.f32.mrf.mxu3 }
 0x135   :  { %v262_v47 = vadd.f32 %v261_v46, %v243_v45 }
 0x137   :  { %266 = vst.msk [vmem:[#allocation2] sm:$0x3] %vm265_vm3, %v262_v47 }
 0x138   :  { %277 = dma.vmem_to_hbm [thread:$0]  %s273_s0, 32, %s275_s15, [#allocation3]  }
 0x13c   :  { %v263_v48 = vpop.f32.mrf.mxu3 }
 0x13d   :  { %408 = dma.done.wait [#allocation3], 32  }
 0x13e   :  { %409 = vsyncadd [#allocation3], 4294967264 }
 0x13f   :  { %282 = vsyncpa [#allocation3], 1 }

</bundles_post_ra>
